<compile_context>
chip_gen: v7x
topology: tpu7x:2x2x1
jax: 0.10.0
libtpu: 0.0.40
codegen_flags: <defaults>
</compile_context>

<pallas_src>
import functools

import jax
import jax.numpy as jnp
from jax.experimental import pallas as pl
from jax.experimental.pallas import tpu as pltpu


def _round_up(n, m):
    return ((n + m - 1) // m) * m


def linear_kernel(p_ref, x_ref, o_ref):
    # p_ref: (4,) f32 in SMEM -> [w0, w1, w2, b]  (scalar reads, no vregs)
    # x_ref: (3, br, 128) VMEM tile: feature-major, batch dense on
    #        (sublane, lane). Indexing the leading (major) axis is free.
    # o_ref: (br, 128) VMEM tile -> dense, unmasked (8,128) stores.
    w0 = p_ref[0]
    w1 = p_ref[1]
    w2 = p_ref[2]
    b = p_ref[3]
    y = x_ref[0] * w0 + x_ref[1] * w1 + x_ref[2] * w2 + b  # f32 accumulate
    o_ref[...] = y.astype(o_ref.dtype)


def polynomial_forward(x, weight, bias, *, block_rows=1024, use_pallas=None):
    """x: (B, 3), weight: (1, 3), bias: (1,) -> (B, 1)."""
    B, F = x.shape
    assert F == 3, "polynomial_model expects 3 input features"

    if use_pallas is None:
        # Below a few thousand samples, launch/relayout overhead dominates;
        # a fused XLA matmul is strictly faster.
        use_pallas = B >= 4096

    if not use_pallas:
        return (x @ weight.astype(x.dtype).T + bias.astype(x.dtype)).reshape(B, 1)

    # ---- Pallas path ----
    # Pad batch only to a multiple of 128 lanes (NOT to a multiple of the
    # block size), then relayout to feature-major (3, nrows, 128). Under jit
    # pad + transpose + reshape fuse into one XLA copy.
    b128 = _round_up(B, 128)
    nrows = b128 // 128
    xp = x if b128 == B else jnp.pad(x, ((0, b128 - B), (0, 0)))
    xt = xp.T.reshape(3, nrows, 128)

    # 4 parameters packed into one tiny SMEM array.
    params = jnp.concatenate(
        [weight.reshape(-1), bias.reshape(-1)]
    ).astype(jnp.float32)  # (4,)

    # Block over rows: big enough to amortize per-step overhead (>=1 MiB/step)
    # but split into >=2 "parallel" steps when possible (v7x has 2 TCs).
    # Keep the sublane dim a multiple of 8 (or the full extent).
    if nrows <= block_rows:
        half = _round_up(pl.cdiv(nrows, 2), 8)
        br = half if half < nrows else nrows
    else:
        br = block_rows
    grid = (pl.cdiv(nrows, br),)

    out = pl.pallas_call(
        linear_kernel,
        out_shape=jax.ShapeDtypeStruct((nrows, 128), x.dtype),
        grid_spec=pltpu.PrefetchScalarGridSpec(
            num_scalar_prefetch=0,
            grid=grid,
            in_specs=[
                # 4 scalars: whole array in SMEM, no tiling, no vector loads.
                pl.BlockSpec(memory_space=pltpu.MemorySpace.SMEM),
                # x tile: (3, br, 128) feature-major, batch dense -> dense DMA.
                pl.BlockSpec((3, br, 128), lambda i: (0, i, 0)),
            ],
            # Dense (br, 128) output slab -> full-width unmasked stores.
            out_specs=pl.BlockSpec((br, 128), lambda i: (i, 0)),
        ),
        compiler_params=pltpu.CompilerParams(
            dimension_semantics=("parallel",),
            # Explicit budget; ~4 MiB of double-buffered blocks fits easily
            # even against v7x's 64 MiB physical VMEM.
            vmem_limit_bytes=32 * 1024 * 1024,
        ),
    )(params, xt)

    # Back to the PyTorch (B, 1) convention; drop lane padding.
    return out.reshape(b128, 1)[:B]


if __name__ == "__main__":
    key = jax.random.PRNGKey(0)
    k_x, k_w, k_b = jax.random.split(key, 3)

    B, F = 8, 3  # batch of 8 samples, 3 polynomial features each

    # Parameter init matching nn.Linear(3, 1):
    # U(-1/sqrt(in_features), 1/sqrt(in_features)).
    bound = 1.0 / jnp.sqrt(jnp.float32(F))
    weight = jax.random.uniform(k_w, (1, F), jnp.float32, -bound, bound)
    bias = jax.random.uniform(k_b, (1,), jnp.float32, -bound, bound)

    x = jax.random.normal(k_x, (B, F), jnp.float32)

    # Force the Pallas path so the kernel itself is exercised even at small B.
    fwd = jax.jit(functools.partial(polynomial_forward, use_pallas=True))
    out = jax.block_until_ready(fwd(x, weight, bias))

    # Reference check in plain JAX.
    ref = x @ weight.T + bias
    assert out.shape == (B, 1), out.shape
    assert jnp.allclose(out, ref, atol=1e-5, rtol=1e-5)

    print("KERNEL_OK")
</pallas_src>

<mosaic_0001>
module attributes {stable_mosaic.version = 11 : i64} {
  func.func @linear_kernel(%arg0: i32, %arg1: memref<4xf32, #tpu.memory_space<smem>>, %arg2: memref<3x1x128xf32, #tpu.memory_space<vmem>>, %arg3: memref<1x128xf32, #tpu.memory_space<vmem>>) attributes {dimension_semantics = [#tpu.dimension_semantics<parallel>], iteration_bounds = array<i64: 1>, scalar_prefetch = 0 : i64, scratch_operands = 0 : i64, tpu.core_type = #tpu.core_type<tc>, window_params = [{transform_indices = @transform_0, window_bounds = array<i64: 4>}, {transform_indices = @transform_1, window_bounds = array<i64: 3, 1, 128>}, {transform_indices = @transform_2, window_bounds = array<i64: 1, 128>}]} {
    %c0 = arith.constant 0 : index
    %0 = memref.load %arg1[%c0] : memref<4xf32, #tpu.memory_space<smem>>
    %c1 = arith.constant 1 : index
    %1 = memref.load %arg1[%c1] : memref<4xf32, #tpu.memory_space<smem>>
    %c2 = arith.constant 2 : index
    %2 = memref.load %arg1[%c2] : memref<4xf32, #tpu.memory_space<smem>>
    %c3 = arith.constant 3 : index
    %3 = memref.load %arg1[%c3] : memref<4xf32, #tpu.memory_space<smem>>
    %c0_0 = arith.constant 0 : index
    %c0_1 = arith.constant 0 : index
    %c0_2 = arith.constant 0 : index
    %4 = vector.load %arg2[%c0_0, %c0_1, %c0_2] : memref<3x1x128xf32, #tpu.memory_space<vmem>>, vector<1x1x128xf32>
    %5 = vector.shape_cast %4 : vector<1x1x128xf32> to vector<1x128xf32>
    %6 = vector.broadcast %0 : f32 to vector<1x128xf32>
    %7 = arith.mulf %5, %6 : vector<1x128xf32>
    %c1_3 = arith.constant 1 : index
    %c0_4 = arith.constant 0 : index
    %c0_5 = arith.constant 0 : index
    %8 = vector.load %arg2[%c1_3, %c0_4, %c0_5] : memref<3x1x128xf32, #tpu.memory_space<vmem>>, vector<1x1x128xf32>
    %9 = vector.shape_cast %8 : vector<1x1x128xf32> to vector<1x128xf32>
    %10 = vector.broadcast %1 : f32 to vector<1x128xf32>
    %11 = arith.mulf %9, %10 : vector<1x128xf32>
    %12 = arith.addf %7, %11 : vector<1x128xf32>
    %c2_6 = arith.constant 2 : index
    %c0_7 = arith.constant 0 : index
    %c0_8 = arith.constant 0 : index
    %13 = vector.load %arg2[%c2_6, %c0_7, %c0_8] : memref<3x1x128xf32, #tpu.memory_space<vmem>>, vector<1x1x128xf32>
    %14 = vector.shape_cast %13 : vector<1x1x128xf32> to vector<1x128xf32>
    %15 = vector.broadcast %2 : f32 to vector<1x128xf32>
    %16 = arith.mulf %14, %15 : vector<1x128xf32>
    %17 = arith.addf %12, %16 : vector<1x128xf32>
    %18 = vector.broadcast %3 : f32 to vector<1x128xf32>
    %19 = arith.addf %17, %18 : vector<1x128xf32>
    %c0_9 = arith.constant 0 : index
    %c0_10 = arith.constant 0 : index
    %20 = vector.load %arg3[%c0_9, %c0_10] : memref<1x128xf32, #tpu.memory_space<vmem>>, vector<1x128xf32>
    tpu.vector_store %arg3[%c0_9, %c0_10], %19 {strides = array<i32>} : memref<1x128xf32, #tpu.memory_space<vmem>>, vector<1x128xf32>,
    return
  }
  func.func @transform_0(%arg0: i32) -> i32 {
    %c0_i32 = arith.constant 0 : i32
    %c0_i32_0 = arith.constant 0 : i32
    return %c0_i32 : i32
  }
  func.func @transform_1(%arg0: i32) -> (i32, i32, i32) {
    %c0_i32 = arith.constant 0 : i32
    %c0_i32_0 = arith.constant 0 : i32
    %c0_i32_1 = arith.constant 0 : i32
    return %c0_i32, %arg0, %c0_i32_0 : i32, i32, i32
  }
  func.func @transform_2(%arg0: i32) -> (i32, i32) {
    %c0_i32 = arith.constant 0 : i32
    %c0_i32_0 = arith.constant 0 : i32
    return %arg0, %c0_i32 : i32, i32
  }
}

</mosaic_0001>

<bundles_post_ra>
// kernel: polynomial_forward.1
= control target key start
LH: loop header
LB: loop body
LE: loop exit
PB: predicated region body
PF: predicated region fallthrough
CT: control target
= control target key end

     0   :  { %7 = vsyncpa [#allocation3], 0  ;;  %s100_s0 = inlined_call_operand.vmem [shape: f32[4], index: 0, kind: input, shape index: {}]   ;;  %s101_s1 = inlined_call_operand.vmem [shape: f32[3,1,128], index: 1, kind: input, shape index: {}]   ;;  %s102_s2 = inlined_call_operand.vmem [shape: f32[1,128], index: 2, kind: output, shape index: {}]  }
   0x1   :  { %s14_s11 = sshll.u32 %s100_s0, 4  ;;  %s15_s11 = int_to_ptr.vmem [resolvable:$true] %s14_s11 }
   0x2   :  { %s55_s12 = scalar_lea.vmem %s15_s11, 16  ;;  %p60_p1 = scmp.lt.s32.totalorder %s15_s11, %s15_s11 }
   0x3   :  { %p56_p0 = scmp.ne.s32.totalorder %s15_s11, %s55_s12  ;;  %p61_p2 = scmp.lt.s32.totalorder %s55_s12, %s55_s12 }
   0x5   :  { %p62_p3 = por %p61_p2, %p60_p1 }
   0x7   :  { %p63_p4 = pnand %p62_p3, %p56_p0 }
   0x9   :  { %66 = shalt.err (!%p63_p4)
}
   0xa   :  { %s69_s13 = smov [#allocation2]  }
   0xb   :  { %17 = dma.vmem_to_smem %s15_s11, 16, %s69_s13, [#allocation3]  }
   0xc   :  { %67 = dma.done.wait [#allocation3], 16  }
   0xd   :  { %68 = vsyncadd [#allocation3], 4294967280 }
   0xe   :  { %23 = sfence }
   0xf   :  { %s24_s14 = sld [smem:[#allocation2]]  ;;  %s49_s15 = sld [smem:[#allocation2 + $0x1]]  ;;  %v28_v0 = vld [vmem:[%s101_s1] sm:$0x1]  ;;  %v52_v1 = vld [vmem:[%s101_s1 + $0x1] sm:$0x1] }
  0x10   :  { %s50_s16 = sld [smem:[#allocation2 + $0x2]]  ;;  %s51_s17 = sld [smem:[#allocation2 + $0x3]]  ;;  %v53_v2 = vld [vmem:[%s101_s1 + $0x2] sm:$0x1] }
  0x15   :  { %v29_v3 = vstv %s24_s14  ;;  %v33_v4 = vstv %s49_s15 }
  0x16   :  { %v30_v5 = vmul.f32 %v29_v3, %v28_v0  ;;  %v34_v6 = vmul.f32 %v52_v1, %v33_v4  ;;  %v38_v7 = vstv %s50_s16  ;;  %v41_v10 = vstv %s51_s17 }
  0x17   :  { %v39_v8 = vmul.f32 %v53_v2, %v38_v7 }
  0x18   :  { %v35_v9 = vadd.f32 %v34_v6, %v30_v5 }
  0x1a   :  { %v40_v11 = vadd.f32 %v39_v8, %v35_v9 }
  0x1c   :  { %v42_v12 = vadd.f32 %v41_v10, %v40_v11 }
  0x1e   :  { %43 = vst [vmem:[%s102_s2] sm:$0x1] %v42_v12 }
  0x1f   :  { %48 = vsyncpa [#allocation3], 1 }

</bundles_post_ra>
